<compile_context>
chip_gen: v5e
topology: v5e:2x2
jax: 0.10.0
libtpu: 0.0.40
codegen_flags: <defaults>
</compile_context>

<pallas_src>
import functools
import math

import jax
import jax.numpy as jnp
from jax import lax
from jax.experimental import pallas as pl
from jax.experimental.pallas import tpu as pltpu


# dot_general dimension numbers for  A @ B.T  (contract last dim of both operands).
_DN_LAST = (((1,), (1,)), ((), ()))


def _mha_fused_kernel(x_ref, wq_ref, wk_ref, wv_ref, wfc_ref, out_ref,
                      ctxflat_ref, *, n_heads, d_k, d_v):
    """Fused MHA forward. ctxflat_ref is a (N, H*d_v) VMEM scratch that holds
    the head-scrambled flat context exactly as PyTorch's
    context.transpose(1,2).reshape(-1, H*d_v) would lay it out."""
    N = x_ref.shape[0]
    HD = n_heads * d_v

    X = x_ref[...]          # (N, D)       f32
    Wq = wq_ref[...]        # (H*d_k, D)
    Wk = wk_ref[...]        # (H*d_k, D)
    Wv = wv_ref[...]        # (H*d_v, D)

    inv_sqrt_dk = jnp.float32(1.0 / math.sqrt(d_k))

    # Wide projections: single MXU calls with an H*d_k-wide output dimension.
    Q = lax.dot_general(X, Wq, _DN_LAST, preferred_element_type=jnp.float32)  # (N, H*d_k)
    Q = Q * inv_sqrt_dk                               # fold 1/sqrt(d_k) into Q
    K = lax.dot_general(X, Wk, _DN_LAST, preferred_element_type=jnp.float32)  # (N, H*d_k)
    # V is produced already per-head-transposed: V_T[r, n] = V[n, r].
    V_T = lax.dot_general(Wv, X, _DN_LAST, preferred_element_type=jnp.float32)  # (H*d_v, N)

    # Per-head attention, fully unrolled inside this single kernel invocation.
    for h in range(n_heads):
        Qh = Q[:, h * d_k:(h + 1) * d_k]          # (N, d_k)
        Kh = K[:, h * d_k:(h + 1) * d_k]          # (N, d_k)
        Vh_T = V_T[h * d_v:(h + 1) * d_v, :]      # (d_v, N)

        scores = lax.dot_general(Qh, Kh, _DN_LAST,
                                 preferred_element_type=jnp.float32)          # (N, N)
        scores = scores - jnp.max(scores, axis=-1, keepdims=True)
        p = jnp.exp(scores)
        denom = jnp.sum(p, axis=-1, keepdims=True)                            # (N, 1)
        attn = p * pl.reciprocal(denom, approx=True)   # EUP reciprocal, no VPU divide

        # ctx_h^T[d, q] = sum_k V[k, h*d_v + d] * attn[q, k]   -> (d_v, N)
        ctx_h_T = lax.dot_general(Vh_T, attn, _DN_LAST,
                                  preferred_element_type=jnp.float32)

        # Reproduce the module's head-scrambling reshape exactly.
        # Row d of ctx_h^T is the contiguous flat chunk starting at offset
        # (h*d_v + d) * N of transpose(context, (0, 2, 1)); in the (N, H*d_v)
        # flat matrix that chunk lands at
        #   row  = (lin * N) // HD,   cols [(lin * N) % HD, ... + N).
        for d in range(d_v):
            lin = h * d_v + d
            row = (lin * N) // HD
            col = (lin * N) % HD
            ctxflat_ref[row:row + 1, col:col + N] = ctx_h_T[d:d + 1, :]

    # Final projection: out = ctx_flat @ W_fc.T, one lane-dense (N, out_dim) store.
    out_ref[...] = lax.dot_general(
        ctxflat_ref[...], wfc_ref[...], _DN_LAST,
        preferred_element_type=jnp.float32).astype(out_ref.dtype)


def multi_head_attention(X, W_Q, W_K, W_V, W_fc, n_heads):
    """Pallas implementation of MultiHeadAttention.forward.

    X:    (N, input_dim)
    W_Q/W_K/W_V: (n_heads * d_k, input_dim)   (PyTorch nn.Linear layout)
    W_fc: (output_dim, n_heads * d_v)
    returns (N, output_dim), float32
    """
    N, D = X.shape
    d_k = D // n_heads
    d_v = d_k
    HD = n_heads * d_v
    out_dim = W_fc.shape[0]

    # The in-kernel reproduction of the head-scrambling reshape stores one
    # length-N chunk per (head, d_v) pair; each chunk must fit inside a single
    # row of the (N, H*d_v) flat matrix.
    assert HD % N == 0, "need (n_heads * d_v) % N == 0 for the in-kernel scramble"
    # TODO(synk): general N (chunks straddling flat rows) would need an
    # element-level scatter or a Mosaic general reshape; not needed here.

    kernel = functools.partial(_mha_fused_kernel,
                               n_heads=n_heads, d_k=d_k, d_v=d_v)
    return pl.pallas_call(
        kernel,
        out_shape=jax.ShapeDtypeStruct((N, out_dim), jnp.float32),
        in_specs=[
            pl.BlockSpec((N, D), lambda: (0, 0)),        # X
            pl.BlockSpec((HD, D), lambda: (0, 0)),       # W_Q
            pl.BlockSpec((HD, D), lambda: (0, 0)),       # W_K
            pl.BlockSpec((HD, D), lambda: (0, 0)),       # W_V
            pl.BlockSpec((out_dim, HD), lambda: (0, 0)), # W_fc
        ],
        out_specs=pl.BlockSpec((N, out_dim), lambda: (0, 0)),
        scratch_shapes=[pltpu.VMEM((N, HD), jnp.float32)],   # scrambled flat context
    )(X, W_Q, W_K, W_V, W_fc)


def _reference(X, W_Q, W_K, W_V, W_fc, n_heads):
    """Pure-JAX transcription of the PyTorch forward for the correctness check."""
    N, D = X.shape
    d_k = D // n_heads
    Q = (X @ W_Q.T).reshape(N, n_heads, d_k).transpose(1, 0, 2)
    K = (X @ W_K.T).reshape(N, n_heads, d_k).transpose(1, 0, 2)
    V = (X @ W_V.T).reshape(N, n_heads, d_k).transpose(1, 0, 2)
    scores = jnp.einsum("hnd,hmd->hnm", Q, K) / jnp.sqrt(jnp.float32(d_k))
    attn = jax.nn.softmax(scores, axis=-1)
    ctx = jnp.einsum("hnm,hmd->hnd", attn, V)
    # Intentional head-scrambling reshape, same as the PyTorch module.
    ctx = jnp.transpose(ctx, (0, 2, 1)).reshape(N, n_heads * d_k)
    return ctx @ W_fc.T


if __name__ == "__main__":
    # Small shapes consistent with the module: seq N=8, input_dim=32, 4 heads.
    N, input_dim, n_heads = 8, 32, 4
    d_k = input_dim // n_heads
    output_dim = input_dim  # ouput_dim=None default in the PyTorch module

    key = jax.random.PRNGKey(0)
    kx, kq, kk, kv, kf = jax.random.split(key, 5)
    scale = 1.0 / math.sqrt(input_dim)

    X = jax.random.normal(kx, (N, input_dim), dtype=jnp.float32)
    W_Q = jax.random.uniform(kq, (n_heads * d_k, input_dim), jnp.float32, -scale, scale)
    W_K = jax.random.uniform(kk, (n_heads * d_k, input_dim), jnp.float32, -scale, scale)
    W_V = jax.random.uniform(kv, (n_heads * d_k, input_dim), jnp.float32, -scale, scale)
    W_fc = jax.random.uniform(kf, (output_dim, n_heads * d_k), jnp.float32, -scale, scale)

    out = multi_head_attention(X, W_Q, W_K, W_V, W_fc, n_heads)
    out = jax.block_until_ready(out)

    ref = _reference(X, W_Q, W_K, W_V, W_fc, n_heads)
    assert out.shape == (N, output_dim), out.shape
    # Slightly loose tolerance: the softmax denominator uses the EUP's
    # approximate reciprocal (pl.reciprocal(..., approx=True)).
    assert jnp.allclose(out, ref, atol=5e-3, rtol=5e-3), float(
        jnp.max(jnp.abs(out - ref)))

    print("KERNEL_OK")
</pallas_src>

<mosaic_0001>
module attributes {stable_mosaic.version = 11 : i64} {
  func.func @_mha_fused_kernel(%arg0: memref<8x32xf32, #tpu.memory_space<vmem>>, %arg1: memref<32x32xf32, #tpu.memory_space<vmem>>, %arg2: memref<32x32xf32, #tpu.memory_space<vmem>>, %arg3: memref<32x32xf32, #tpu.memory_space<vmem>>, %arg4: memref<32x32xf32, #tpu.memory_space<vmem>>, %arg5: memref<8x32xf32, #tpu.memory_space<vmem>>, %arg6: memref<8x32xf32, #tpu.memory_space<vmem>>) attributes {dimension_semantics = [], scalar_prefetch = 0 : i64, scratch_operands = 1 : i64, tpu.core_type = #tpu.core_type<tc>} {
    %c0 = arith.constant 0 : index
    %c0_0 = arith.constant 0 : index
    %0 = vector.load %arg0[%c0, %c0_0] : memref<8x32xf32, #tpu.memory_space<vmem>>, vector<8x32xf32>
    %c0_1 = arith.constant 0 : index
    %c0_2 = arith.constant 0 : index
    %1 = vector.load %arg1[%c0_1, %c0_2] : memref<32x32xf32, #tpu.memory_space<vmem>>, vector<32x32xf32>
    %c0_3 = arith.constant 0 : index
    %c0_4 = arith.constant 0 : index
    %2 = vector.load %arg2[%c0_3, %c0_4] : memref<32x32xf32, #tpu.memory_space<vmem>>, vector<32x32xf32>
    %c0_5 = arith.constant 0 : index
    %c0_6 = arith.constant 0 : index
    %3 = vector.load %arg3[%c0_5, %c0_6] : memref<32x32xf32, #tpu.memory_space<vmem>>, vector<32x32xf32>
    %cst = arith.constant dense<0.000000e+00> : vector<8x32xf32>
    %4 = tpu.matmul %0, %1, %cst {dimension_numbers = #tpu.dot_dimension_numbers<[1], [1], [0], [0], [0, 0, 1, 0], [], []>} : vector<8x32xf32>, vector<32x32xf32>, vector<8x32xf32> -> vector<8x32xf32>
    %cst_7 = arith.constant 0.353553385 : f32
    %5 = vector.broadcast %cst_7 : f32 to vector<8x32xf32>
    %6 = arith.mulf %4, %5 : vector<8x32xf32>
    %cst_8 = arith.constant dense<0.000000e+00> : vector<8x32xf32>
    %7 = tpu.matmul %0, %2, %cst_8 {dimension_numbers = #tpu.dot_dimension_numbers<[1], [1], [0], [0], [0, 0, 1, 0], [], []>} : vector<8x32xf32>, vector<32x32xf32>, vector<8x32xf32> -> vector<8x32xf32>
    %cst_9 = arith.constant dense<0.000000e+00> : vector<32x8xf32>
    %8 = tpu.matmul %3, %0, %cst_9 {dimension_numbers = #tpu.dot_dimension_numbers<[1], [1], [0], [0], [0, 0, 1, 0], [], []>} : vector<32x32xf32>, vector<8x32xf32>, vector<32x8xf32> -> vector<32x8xf32>
    %9 = vector.extract_strided_slice %6 {offsets = [0, 0], sizes = [8, 8], strides = [1, 1]} : vector<8x32xf32> to vector<8x8xf32>
    %10 = vector.extract_strided_slice %7 {offsets = [0, 0], sizes = [8, 8], strides = [1, 1]} : vector<8x32xf32> to vector<8x8xf32>
    %11 = vector.extract_strided_slice %8 {offsets = [0, 0], sizes = [8, 8], strides = [1, 1]} : vector<32x8xf32> to vector<8x8xf32>
    %cst_10 = arith.constant dense<0.000000e+00> : vector<8x8xf32>
    %12 = tpu.matmul %9, %10, %cst_10 {dimension_numbers = #tpu.dot_dimension_numbers<[1], [1], [0], [0], [0, 0, 1, 0], [], []>} : vector<8x8xf32>, vector<8x8xf32>, vector<8x8xf32> -> vector<8x8xf32>
    %cst_11 = arith.constant dense<0xFF800000> : vector<8xf32>
    %13 = vector.multi_reduction <maximumf>, %12, %cst_11 [1] : vector<8x8xf32> to vector<8xf32>
    %14 = vector.shape_cast %13 : vector<8xf32> to vector<8x1xf32>
    %15 = vector.broadcast %14 : vector<8x1xf32> to vector<8x8xf32>
    %16 = arith.subf %12, %15 : vector<8x8xf32>
    %17 = math.exp %16 : vector<8x8xf32>
    %cst_12 = arith.constant dense<0.000000e+00> : vector<8xf32>
    %18 = vector.multi_reduction <add>, %17, %cst_12 [1] : vector<8x8xf32> to vector<8xf32>
    %19 = vector.shape_cast %18 : vector<8xf32> to vector<8x1xf32>
    %20 = tpu.reciprocal %19 {approx = true} : vector<8x1xf32> -> vector<8x1xf32>
    %21 = vector.broadcast %20 : vector<8x1xf32> to vector<8x8xf32>
    %22 = arith.mulf %17, %21 : vector<8x8xf32>
    %cst_13 = arith.constant dense<0.000000e+00> : vector<8x8xf32>
    %23 = tpu.matmul %11, %22, %cst_13 {dimension_numbers = #tpu.dot_dimension_numbers<[1], [1], [0], [0], [0, 0, 1, 0], [], []>} : vector<8x8xf32>, vector<8x8xf32>, vector<8x8xf32> -> vector<8x8xf32>
    %24 = vector.extract_strided_slice %23 {offsets = [0, 0], sizes = [1, 8], strides = [1, 1]} : vector<8x8xf32> to vector<1x8xf32>
    %c0_14 = arith.constant 0 : index
    %c0_15 = arith.constant 0 : index
    %25 = vector.load %arg6[%c0_14, %c0_15] : memref<8x32xf32, #tpu.memory_space<vmem>>, vector<1x8xf32>
    tpu.vector_store %arg6[%c0_14, %c0_15], %24 {strides = array<i32>} : memref<8x32xf32, #tpu.memory_space<vmem>>, vector<1x8xf32>,
    %26 = vector.extract_strided_slice %23 {offsets = [1, 0], sizes = [1, 8], strides = [1, 1]} : vector<8x8xf32> to vector<1x8xf32>
    %c0_16 = arith.constant 0 : index
    %c8 = arith.constant 8 : index
    %27 = vector.load %arg6[%c0_16, %c8] : memref<8x32xf32, #tpu.memory_space<vmem>>, vector<1x8xf32>
    tpu.vector_store %arg6[%c0_16, %c8], %26 {strides = array<i32>} : memref<8x32xf32, #tpu.memory_space<vmem>>, vector<1x8xf32>,
    %28 = vector.extract_strided_slice %23 {offsets = [2, 0], sizes = [1, 8], strides = [1, 1]} : vector<8x8xf32> to vector<1x8xf32>
    %c0_17 = arith.constant 0 : index
    %c16 = arith.constant 16 : index
    %29 = vector.load %arg6[%c0_17, %c16] : memref<8x32xf32, #tpu.memory_space<vmem>>, vector<1x8xf32>
    tpu.vector_store %arg6[%c0_17, %c16], %28 {strides = array<i32>} : memref<8x32xf32, #tpu.memory_space<vmem>>, vector<1x8xf32>,
    %30 = vector.extract_strided_slice %23 {offsets = [3, 0], sizes = [1, 8], strides = [1, 1]} : vector<8x8xf32> to vector<1x8xf32>
    %c0_18 = arith.constant 0 : index
    %c24 = arith.constant 24 : index
    %31 = vector.load %arg6[%c0_18, %c24] : memref<8x32xf32, #tpu.memory_space<vmem>>, vector<1x8xf32>
    tpu.vector_store %arg6[%c0_18, %c24], %30 {strides = array<i32>} : memref<8x32xf32, #tpu.memory_space<vmem>>, vector<1x8xf32>,
    %32 = vector.extract_strided_slice %23 {offsets = [4, 0], sizes = [1, 8], strides = [1, 1]} : vector<8x8xf32> to vector<1x8xf32>
    %c1 = arith.constant 1 : index
    %c0_19 = arith.constant 0 : index
    %33 = vector.load %arg6[%c1, %c0_19] : memref<8x32xf32, #tpu.memory_space<vmem>>, vector<1x8xf32>
    tpu.vector_store %arg6[%c1, %c0_19], %32 {strides = array<i32>} : memref<8x32xf32, #tpu.memory_space<vmem>>, vector<1x8xf32>,
    %34 = vector.extract_strided_slice %23 {offsets = [5, 0], sizes = [1, 8], strides = [1, 1]} : vector<8x8xf32> to vector<1x8xf32>
    %c1_20 = arith.constant 1 : index
    %c8_21 = arith.constant 8 : index
    %35 = vector.load %arg6[%c1_20, %c8_21] : memref<8x32xf32, #tpu.memory_space<vmem>>, vector<1x8xf32>
    tpu.vector_store %arg6[%c1_20, %c8_21], %34 {strides = array<i32>} : memref<8x32xf32, #tpu.memory_space<vmem>>, vector<1x8xf32>,
    %36 = vector.extract_strided_slice %23 {offsets = [6, 0], sizes = [1, 8], strides = [1, 1]} : vector<8x8xf32> to vector<1x8xf32>
    %c1_22 = arith.constant 1 : index
    %c16_23 = arith.constant 16 : index
    %37 = vector.load %arg6[%c1_22, %c16_23] : memref<8x32xf32, #tpu.memory_space<vmem>>, vector<1x8xf32>
    tpu.vector_store %arg6[%c1_22, %c16_23], %36 {strides = array<i32>} : memref<8x32xf32, #tpu.memory_space<vmem>>, vector<1x8xf32>,
    %38 = vector.extract_strided_slice %23 {offsets = [7, 0], sizes = [1, 8], strides = [1, 1]} : vector<8x8xf32> to vector<1x8xf32>
    %c1_24 = arith.constant 1 : index
    %c24_25 = arith.constant 24 : index
    %39 = vector.load %arg6[%c1_24, %c24_25] : memref<8x32xf32, #tpu.memory_space<vmem>>, vector<1x8xf32>
    tpu.vector_store %arg6[%c1_24, %c24_25], %38 {strides = array<i32>} : memref<8x32xf32, #tpu.memory_space<vmem>>, vector<1x8xf32>,
    %40 = vector.extract_strided_slice %6 {offsets = [0, 8], sizes = [8, 8], strides = [1, 1]} : vector<8x32xf32> to vector<8x8xf32>
    %41 = vector.extract_strided_slice %7 {offsets = [0, 8], sizes = [8, 8], strides = [1, 1]} : vector<8x32xf32> to vector<8x8xf32>
    %42 = vector.extract_strided_slice %8 {offsets = [8, 0], sizes = [8, 8], strides = [1, 1]} : vector<32x8xf32> to vector<8x8xf32>
    %cst_26 = arith.constant dense<0.000000e+00> : vector<8x8xf32>
    %43 = tpu.matmul %40, %41, %cst_26 {dimension_numbers = #tpu.dot_dimension_numbers<[1], [1], [0], [0], [0, 0, 1, 0], [], []>} : vector<8x8xf32>, vector<8x8xf32>, vector<8x8xf32> -> vector<8x8xf32>
    %cst_27 = arith.constant dense<0xFF800000> : vector<8xf32>
    %44 = vector.multi_reduction <maximumf>, %43, %cst_27 [1] : vector<8x8xf32> to vector<8xf32>
    %45 = vector.shape_cast %44 : vector<8xf32> to vector<8x1xf32>
    %46 = vector.broadcast %45 : vector<8x1xf32> to vector<8x8xf32>
    %47 = arith.subf %43, %46 : vector<8x8xf32>
    %48 = math.exp %47 : vector<8x8xf32>
    %cst_28 = arith.constant dense<0.000000e+00> : vector<8xf32>
    %49 = vector.multi_reduction <add>, %48, %cst_28 [1] : vector<8x8xf32> to vector<8xf32>
    %50 = vector.shape_cast %49 : vector<8xf32> to vector<8x1xf32>
    %51 = tpu.reciprocal %50 {approx = true} : vector<8x1xf32> -> vector<8x1xf32>
    %52 = vector.broadcast %51 : vector<8x1xf32> to vector<8x8xf32>
    %53 = arith.mulf %48, %52 : vector<8x8xf32>
    %cst_29 = arith.constant dense<0.000000e+00> : vector<8x8xf32>
    %54 = tpu.matmul %42, %53, %cst_29 {dimension_numbers = #tpu.dot_dimension_numbers<[1], [1], [0], [0], [0, 0, 1, 0], [], []>} : vector<8x8xf32>, vector<8x8xf32>, vector<8x8xf32> -> vector<8x8xf32>
    %55 = vector.extract_strided_slice %54 {offsets = [0, 0], sizes = [1, 8], strides = [1, 1]} : vector<8x8xf32> to vector<1x8xf32>
    %c2 = arith.constant 2 : index
    %c0_30 = arith.constant 0 : index
    %56 = vector.load %arg6[%c2, %c0_30] : memref<8x32xf32, #tpu.memory_space<vmem>>, vector<1x8xf32>
    tpu.vector_store %arg6[%c2, %c0_30], %55 {strides = array<i32>} : memref<8x32xf32, #tpu.memory_space<vmem>>, vector<1x8xf32>,
    %57 = vector.extract_strided_slice %54 {offsets = [1, 0], sizes = [1, 8], strides = [1, 1]} : vector<8x8xf32> to vector<1x8xf32>
    %c2_31 = arith.constant 2 : index
    %c8_32 = arith.constant 8 : index
    %58 = vector.load %arg6[%c2_31, %c8_32] : memref<8x32xf32, #tpu.memory_space<vmem>>, vector<1x8xf32>
    tpu.vector_store %arg6[%c2_31, %c8_32], %57 {strides = array<i32>} : memref<8x32xf32, #tpu.memory_space<vmem>>, vector<1x8xf32>,
    %59 = vector.extract_strided_slice %54 {offsets = [2, 0], sizes = [1, 8], strides = [1, 1]} : vector<8x8xf32> to vector<1x8xf32>
    %c2_33 = arith.constant 2 : index
    %c16_34 = arith.constant 16 : index
    %60 = vector.load %arg6[%c2_33, %c16_34] : memref<8x32xf32, #tpu.memory_space<vmem>>, vector<1x8xf32>
    tpu.vector_store %arg6[%c2_33, %c16_34], %59 {strides = array<i32>} : memref<8x32xf32, #tpu.memory_space<vmem>>, vector<1x8xf32>,
    %61 = vector.extract_strided_slice %54 {offsets = [3, 0], sizes = [1, 8], strides = [1, 1]} : vector<8x8xf32> to vector<1x8xf32>
    %c2_35 = arith.constant 2 : index
    %c24_36 = arith.constant 24 : index
    %62 = vector.load %arg6[%c2_35, %c24_36] : memref<8x32xf32, #tpu.memory_space<vmem>>, vector<1x8xf32>
    tpu.vector_store %arg6[%c2_35, %c24_36], %61 {strides = array<i32>} : memref<8x32xf32, #tpu.memory_space<vmem>>, vector<1x8xf32>,
    %63 = vector.extract_strided_slice %54 {offsets = [4, 0], sizes = [1, 8], strides = [1, 1]} : vector<8x8xf32> to vector<1x8xf32>
    %c3 = arith.constant 3 : index
    %c0_37 = arith.constant 0 : index
    %64 = vector.load %arg6[%c3, %c0_37] : memref<8x32xf32, #tpu.memory_space<vmem>>, vector<1x8xf32>
    tpu.vector_store %arg6[%c3, %c0_37], %63 {strides = array<i32>} : memref<8x32xf32, #tpu.memory_space<vmem>>, vector<1x8xf32>,
    %65 = vector.extract_strided_slice %54 {offsets = [5, 0], sizes = [1, 8], strides = [1, 1]} : vector<8x8xf32> to vector<1x8xf32>
    %c3_38 = arith.constant 3 : index
    %c8_39 = arith.constant 8 : index
    %66 = vector.load %arg6[%c3_38, %c8_39] : memref<8x32xf32, #tpu.memory_space<vmem>>, vector<1x8xf32>
    tpu.vector_store %arg6[%c3_38, %c8_39], %65 {strides = array<i32>} : memref<8x32xf32, #tpu.memory_space<vmem>>, vector<1x8xf32>,
    %67 = vector.extract_strided_slice %54 {offsets = [6, 0], sizes = [1, 8], strides = [1, 1]} : vector<8x8xf32> to vector<1x8xf32>
    %c3_40 = arith.constant 3 : index
    %c16_41 = arith.constant 16 : index
    %68 = vector.load %arg6[%c3_40, %c16_41] : memref<8x32xf32, #tpu.memory_space<vmem>>, vector<1x8xf32>
    tpu.vector_store %arg6[%c3_40, %c16_41], %67 {strides = array<i32>} : memref<8x32xf32, #tpu.memory_space<vmem>>, vector<1x8xf32>,
    %69 = vector.extract_strided_slice %54 {offsets = [7, 0], sizes = [1, 8], strides = [1, 1]} : vector<8x8xf32> to vector<1x8xf32>
    %c3_42 = arith.constant 3 : index
    %c24_43 = arith.constant 24 : index
    %70 = vector.load %arg6[%c3_42, %c24_43] : memref<8x32xf32, #tpu.memory_space<vmem>>, vector<1x8xf32>
    tpu.vector_store %arg6[%c3_42, %c24_43], %69 {strides = array<i32>} : memref<8x32xf32, #tpu.memory_space<vmem>>, vector<1x8xf32>,
    %71 = vector.extract_strided_slice %6 {offsets = [0, 16], sizes = [8, 8], strides = [1, 1]} : vector<8x32xf32> to vector<8x8xf32>
    %72 = vector.extract_strided_slice %7 {offsets = [0, 16], sizes = [8, 8], strides = [1, 1]} : vector<8x32xf32> to vector<8x8xf32>
    %73 = vector.extract_strided_slice %8 {offsets = [16, 0], sizes = [8, 8], strides = [1, 1]} : vector<32x8xf32> to vector<8x8xf32>
    %cst_44 = arith.constant dense<0.000000e+00> : vector<8x8xf32>
    %74 = tpu.matmul %71, %72, %cst_44 {dimension_numbers = #tpu.dot_dimension_numbers<[1], [1], [0], [0], [0, 0, 1, 0], [], []>} : vector<8x8xf32>, vector<8x8xf32>, vector<8x8xf32> -> vector<8x8xf32>
    %cst_45 = arith.constant dense<0xFF800000> : vector<8xf32>
    %75 = vector.multi_reduction <maximumf>, %74, %cst_45 [1] : vector<8x8xf32> to vector<8xf32>
    %76 = vector.shape_cast %75 : vector<8xf32> to vector<8x1xf32>
    %77 = vector.broadcast %76 : vector<8x1xf32> to vector<8x8xf32>
    %78 = arith.subf %74, %77 : vector<8x8xf32>
    %79 = math.exp %78 : vector<8x8xf32>
    %cst_46 = arith.constant dense<0.000000e+00> : vector<8xf32>
    %80 = vector.multi_reduction <add>, %79, %cst_46 [1] : vector<8x8xf32> to vector<8xf32>
    %81 = vector.shape_cast %80 : vector<8xf32> to vector<8x1xf32>
    %82 = tpu.reciprocal %81 {approx = true} : vector<8x1xf32> -> vector<8x1xf32>
    %83 = vector.broadcast %82 : vector<8x1xf32> to vector<8x8xf32>
    %84 = arith.mulf %79, %83 : vector<8x8xf32>
    %cst_47 = arith.constant dense<0.000000e+00> : vector<8x8xf32>
    %85 = tpu.matmul %73, %84, %cst_47 {dimension_numbers = #tpu.dot_dimension_numbers<[1], [1], [0], [0], [0, 0, 1, 0], [], []>} : vector<8x8xf32>, vector<8x8xf32>, vector<8x8xf32> -> vector<8x8xf32>
    %86 = vector.extract_strided_slice %85 {offsets = [0, 0], sizes = [1, 8], strides = [1, 1]} : vector<8x8xf32> to vector<1x8xf32>
    %c4 = arith.constant 4 : index
    %c0_48 = arith.constant 0 : index
    %87 = vector.load %arg6[%c4, %c0_48] : memref<8x32xf32, #tpu.memory_space<vmem>>, vector<1x8xf32>
    tpu.vector_store %arg6[%c4, %c0_48], %86 {strides = array<i32>} : memref<8x32xf32, #tpu.memory_space<vmem>>, vector<1x8xf32>,
    %88 = vector.extract_strided_slice %85 {offsets = [1, 0], sizes = [1, 8], strides = [1, 1]} : vector<8x8xf32> to vector<1x8xf32>
    %c4_49 = arith.constant 4 : index
    %c8_50 = arith.constant 8 : index
    %89 = vector.load %arg6[%c4_49, %c8_50] : memref<8x32xf32, #tpu.memory_space<vmem>>, vector<1x8xf32>
    tpu.vector_store %arg6[%c4_49, %c8_50], %88 {strides = array<i32>} : memref<8x32xf32, #tpu.memory_space<vmem>>, vector<1x8xf32>,
    %90 = vector.extract_strided_slice %85 {offsets = [2, 0], sizes = [1, 8], strides = [1, 1]} : vector<8x8xf32> to vector<1x8xf32>
    %c4_51 = arith.constant 4 : index
    %c16_52 = arith.constant 16 : index
    %91 = vector.load %arg6[%c4_51, %c16_52] : memref<8x32xf32, #tpu.memory_space<vmem>>, vector<1x8xf32>
    tpu.vector_store %arg6[%c4_51, %c16_52], %90 {strides = array<i32>} : memref<8x32xf32, #tpu.memory_space<vmem>>, vector<1x8xf32>,
    %92 = vector.extract_strided_slice %85 {offsets = [3, 0], sizes = [1, 8], strides = [1, 1]} : vector<8x8xf32> to vector<1x8xf32>
    %c4_53 = arith.constant 4 : index
    %c24_54 = arith.constant 24 : index
    %93 = vector.load %arg6[%c4_53, %c24_54] : memref<8x32xf32, #tpu.memory_space<vmem>>, vector<1x8xf32>
    tpu.vector_store %arg6[%c4_53, %c24_54], %92 {strides = array<i32>} : memref<8x32xf32, #tpu.memory_space<vmem>>, vector<1x8xf32>,
    %94 = vector.extract_strided_slice %85 {offsets = [4, 0], sizes = [1, 8], strides = [1, 1]} : vector<8x8xf32> to vector<1x8xf32>
    %c5 = arith.constant 5 : index
    %c0_55 = arith.constant 0 : index
    %95 = vector.load %arg6[%c5, %c0_55] : memref<8x32xf32, #tpu.memory_space<vmem>>, vector<1x8xf32>
    tpu.vector_store %arg6[%c5, %c0_55], %94 {strides = array<i32>} : memref<8x32xf32, #tpu.memory_space<vmem>>, vector<1x8xf32>,
    %96 = vector.extract_strided_slice %85 {offsets = [5, 0], sizes = [1, 8], strides = [1, 1]} : vector<8x8xf32> to vector<1x8xf32>
    %c5_56 = arith.constant 5 : index
    %c8_57 = arith.constant 8 : index
    %97 = vector.load %arg6[%c5_56, %c8_57] : memref<8x32xf32, #tpu.memory_space<vmem>>, vector<1x8xf32>
    tpu.vector_store %arg6[%c5_56, %c8_57], %96 {strides = array<i32>} : memref<8x32xf32, #tpu.memory_space<vmem>>, vector<1x8xf32>,
    %98 = vector.extract_strided_slice %85 {offsets = [6, 0], sizes = [1, 8], strides = [1, 1]} : vector<8x8xf32> to vector<1x8xf32>
    %c5_58 = arith.constant 5 : index
    %c16_59 = arith.constant 16 : index
    %99 = vector.load %arg6[%c5_58, %c16_59] : memref<8x32xf32, #tpu.memory_space<vmem>>, vector<1x8xf32>
    tpu.vector_store %arg6[%c5_58, %c16_59], %98 {strides = array<i32>} : memref<8x32xf32, #tpu.memory_space<vmem>>, vector<1x8xf32>,
    %100 = vector.extract_strided_slice %85 {offsets = [7, 0], sizes = [1, 8], strides = [1, 1]} : vector<8x8xf32> to vector<1x8xf32>
    %c5_60 = arith.constant 5 : index
    %c24_61 = arith.constant 24 : index
    %101 = vector.load %arg6[%c5_60, %c24_61] : memref<8x32xf32, #tpu.memory_space<vmem>>, vector<1x8xf32>
    tpu.vector_store %arg6[%c5_60, %c24_61], %100 {strides = array<i32>} : memref<8x32xf32, #tpu.memory_space<vmem>>, vector<1x8xf32>,
    %102 = vector.extract_strided_slice %6 {offsets = [0, 24], sizes = [8, 8], strides = [1, 1]} : vector<8x32xf32> to vector<8x8xf32>
    %103 = vector.extract_strided_slice %7 {offsets = [0, 24], sizes = [8, 8], strides = [1, 1]} : vector<8x32xf32> to vector<8x8xf32>
    %104 = vector.extract_strided_slice %8 {offsets = [24, 0], sizes = [8, 8], strides = [1, 1]} : vector<32x8xf32> to vector<8x8xf32>
    %cst_62 = arith.constant dense<0.000000e+00> : vector<8x8xf32>
    %105 = tpu.matmul %102, %103, %cst_62 {dimension_numbers = #tpu.dot_dimension_numbers<[1], [1], [0], [0], [0, 0, 1, 0], [], []>} : vector<8x8xf32>, vector<8x8xf32>, vector<8x8xf32> -> vector<8x8xf32>
    %cst_63 = arith.constant dense<0xFF800000> : vector<8xf32>
    %106 = vector.multi_reduction <maximumf>, %105, %cst_63 [1] : vector<8x8xf32> to vector<8xf32>
    %107 = vector.shape_cast %106 : vector<8xf32> to vector<8x1xf32>
    %108 = vector.broadcast %107 : vector<8x1xf32> to vector<8x8xf32>
    %109 = arith.subf %105, %108 : vector<8x8xf32>
    %110 = math.exp %109 : vector<8x8xf32>
    %cst_64 = arith.constant dense<0.000000e+00> : vector<8xf32>
    %111 = vector.multi_reduction <add>, %110, %cst_64 [1] : vector<8x8xf32> to vector<8xf32>
    %112 = vector.shape_cast %111 : vector<8xf32> to vector<8x1xf32>
    %113 = tpu.reciprocal %112 {approx = true} : vector<8x1xf32> -> vector<8x1xf32>
    %114 = vector.broadcast %113 : vector<8x1xf32> to vector<8x8xf32>
    %115 = arith.mulf %110, %114 : vector<8x8xf32>
    %cst_65 = arith.constant dense<0.000000e+00> : vector<8x8xf32>
    %116 = tpu.matmul %104, %115, %cst_65 {dimension_numbers = #tpu.dot_dimension_numbers<[1], [1], [0], [0], [0, 0, 1, 0], [], []>} : vector<8x8xf32>, vector<8x8xf32>, vector<8x8xf32> -> vector<8x8xf32>
    %117 = vector.extract_strided_slice %116 {offsets = [0, 0], sizes = [1, 8], strides = [1, 1]} : vector<8x8xf32> to vector<1x8xf32>
    %c6 = arith.constant 6 : index
    %c0_66 = arith.constant 0 : index
    %118 = vector.load %arg6[%c6, %c0_66] : memref<8x32xf32, #tpu.memory_space<vmem>>, vector<1x8xf32>
    tpu.vector_store %arg6[%c6, %c0_66], %117 {strides = array<i32>} : memref<8x32xf32, #tpu.memory_space<vmem>>, vector<1x8xf32>,
    %119 = vector.extract_strided_slice %116 {offsets = [1, 0], sizes = [1, 8], strides = [1, 1]} : vector<8x8xf32> to vector<1x8xf32>
    %c6_67 = arith.constant 6 : index
    %c8_68 = arith.constant 8 : index
    %120 = vector.load %arg6[%c6_67, %c8_68] : memref<8x32xf32, #tpu.memory_space<vmem>>, vector<1x8xf32>
    tpu.vector_store %arg6[%c6_67, %c8_68], %119 {strides = array<i32>} : memref<8x32xf32, #tpu.memory_space<vmem>>, vector<1x8xf32>,
    %121 = vector.extract_strided_slice %116 {offsets = [2, 0], sizes = [1, 8], strides = [1, 1]} : vector<8x8xf32> to vector<1x8xf32>
    %c6_69 = arith.constant 6 : index
    %c16_70 = arith.constant 16 : index
    %122 = vector.load %arg6[%c6_69, %c16_70] : memref<8x32xf32, #tpu.memory_space<vmem>>, vector<1x8xf32>
    tpu.vector_store %arg6[%c6_69, %c16_70], %121 {strides = array<i32>} : memref<8x32xf32, #tpu.memory_space<vmem>>, vector<1x8xf32>,
    %123 = vector.extract_strided_slice %116 {offsets = [3, 0], sizes = [1, 8], strides = [1, 1]} : vector<8x8xf32> to vector<1x8xf32>
    %c6_71 = arith.constant 6 : index
    %c24_72 = arith.constant 24 : index
    %124 = vector.load %arg6[%c6_71, %c24_72] : memref<8x32xf32, #tpu.memory_space<vmem>>, vector<1x8xf32>
    tpu.vector_store %arg6[%c6_71, %c24_72], %123 {strides = array<i32>} : memref<8x32xf32, #tpu.memory_space<vmem>>, vector<1x8xf32>,
    %125 = vector.extract_strided_slice %116 {offsets = [4, 0], sizes = [1, 8], strides = [1, 1]} : vector<8x8xf32> to vector<1x8xf32>
    %c7 = arith.constant 7 : index
    %c0_73 = arith.constant 0 : index
    %126 = vector.load %arg6[%c7, %c0_73] : memref<8x32xf32, #tpu.memory_space<vmem>>, vector<1x8xf32>
    tpu.vector_store %arg6[%c7, %c0_73], %125 {strides = array<i32>} : memref<8x32xf32, #tpu.memory_space<vmem>>, vector<1x8xf32>,
    %127 = vector.extract_strided_slice %116 {offsets = [5, 0], sizes = [1, 8], strides = [1, 1]} : vector<8x8xf32> to vector<1x8xf32>
    %c7_74 = arith.constant 7 : index
    %c8_75 = arith.constant 8 : index
    %128 = vector.load %arg6[%c7_74, %c8_75] : memref<8x32xf32, #tpu.memory_space<vmem>>, vector<1x8xf32>
    tpu.vector_store %arg6[%c7_74, %c8_75], %127 {strides = array<i32>} : memref<8x32xf32, #tpu.memory_space<vmem>>, vector<1x8xf32>,
    %129 = vector.extract_strided_slice %116 {offsets = [6, 0], sizes = [1, 8], strides = [1, 1]} : vector<8x8xf32> to vector<1x8xf32>
    %c7_76 = arith.constant 7 : index
    %c16_77 = arith.constant 16 : index
    %130 = vector.load %arg6[%c7_76, %c16_77] : memref<8x32xf32, #tpu.memory_space<vmem>>, vector<1x8xf32>
    tpu.vector_store %arg6[%c7_76, %c16_77], %129 {strides = array<i32>} : memref<8x32xf32, #tpu.memory_space<vmem>>, vector<1x8xf32>,
    %131 = vector.extract_strided_slice %116 {offsets = [7, 0], sizes = [1, 8], strides = [1, 1]} : vector<8x8xf32> to vector<1x8xf32>
    %c7_78 = arith.constant 7 : index
    %c24_79 = arith.constant 24 : index
    %132 = vector.load %arg6[%c7_78, %c24_79] : memref<8x32xf32, #tpu.memory_space<vmem>>, vector<1x8xf32>
    tpu.vector_store %arg6[%c7_78, %c24_79], %131 {strides = array<i32>} : memref<8x32xf32, #tpu.memory_space<vmem>>, vector<1x8xf32>,
    %c0_80 = arith.constant 0 : index
    %c0_81 = arith.constant 0 : index
    %133 = vector.load %arg6[%c0_80, %c0_81] : memref<8x32xf32, #tpu.memory_space<vmem>>, vector<8x32xf32>
    %c0_82 = arith.constant 0 : index
    %c0_83 = arith.constant 0 : index
    %134 = vector.load %arg4[%c0_82, %c0_83] : memref<32x32xf32, #tpu.memory_space<vmem>>, vector<32x32xf32>
    %cst_84 = arith.constant dense<0.000000e+00> : vector<8x32xf32>
    %135 = tpu.matmul %133, %134, %cst_84 {dimension_numbers = #tpu.dot_dimension_numbers<[1], [1], [0], [0], [0, 0, 1, 0], [], []>} : vector<8x32xf32>, vector<32x32xf32>, vector<8x32xf32> -> vector<8x32xf32>
    %c0_85 = arith.constant 0 : index
    %c0_86 = arith.constant 0 : index
    %136 = vector.load %arg5[%c0_85, %c0_86] : memref<8x32xf32, #tpu.memory_space<vmem>>, vector<8x32xf32>
    tpu.vector_store %arg5[%c0_85, %c0_86], %135 {strides = array<i32>} : memref<8x32xf32, #tpu.memory_space<vmem>>, vector<8x32xf32>,
    return
  }
}

</mosaic_0001>

<bundles_post_ra>
// kernel: tpu_custom_call.1
= control target key start
LH: loop header
LB: loop body
LE: loop exit
PB: predicated region body
PF: predicated region fallthrough
CT: control target
= control target key end

     0   :  { %10 = vsyncpa [#allocation4], 0  ;;  %s992_s0 = inlined_call_operand.hbm [shape: f32[8,32], index: 0, kind: input, shape index: {}]   ;;  %s993_s1 = inlined_call_operand.hbm [shape: f32[32,32], index: 1, kind: input, shape index: {}]   ;;  %s994_s2 = inlined_call_operand.hbm [shape: f32[32,32], index: 2, kind: input, shape index: {}]   ;;  %s995_s3 = inlined_call_operand.hbm [shape: f32[32,32], index: 3, kind: input, shape index: {}]   ;;  %s996_s4 = inlined_call_operand.hbm [shape: f32[32,32], index: 4, kind: input, shape index: {}]   ;;  %s997_s5 = inlined_call_operand.hbm [shape: f32[8,32], index: 5, kind: output, shape index: {}]  }
   0x1   :  { %11 = vsyncpa [#allocation7], 0 }
   0x2   :  { %12 = vsyncpa [#allocation10], 0  ;;  %s29_s20 = sshll.u32 %s993_s1, 4  ;;  %s30_s20 = int_to_ptr.hbm [resolvable:$true] %s29_s20 }
   0x3   :  { %13 = vsyncpa [#allocation5], 0  ;;  %s836_s21 = smov [#allocation6]   ;;  %s55_s25 = sshll.u32 %s995_s3, 4  ;;  %s56_s25 = int_to_ptr.hbm [resolvable:$true] %s55_s25 }
   0x4   :  { %s31_s22 = sshll.u32 %s836_s21, 4  ;;  %s837_s26 = smov 128   ;;  %s32_s22 = int_to_ptr.vmem [resolvable:$true] %s31_s22 }
   0x5   :  { %s838_s27 = smov 8   ;;  %s839_s28 = smov [#allocation9]  }
   0x6   :  { %37 = dma.hbm_to_vmem [thread:$0]  %s30_s20, 512, %s32_s22, [#allocation7], %s837_s26, %s837_s26, %s838_s27  }
   0x7   :  { %s57_s29 = sshll.u32 %s839_s28, 4  ;;  %s19_s1 = sshll.u32 %s992_s0, 4  ;;  %s58_s29 = int_to_ptr.vmem [resolvable:$true] %s57_s29  ;;  %s20_s1 = int_to_ptr.hbm [resolvable:$true] %s19_s1 }
   0x8   :  { %63 = dma.hbm_to_vmem [thread:$0]  %s56_s25, 512, %s58_s29, [#allocation10], %s837_s26, %s837_s26, %s838_s27  }
   0x9   :  { %s42_s9 = sshll.u32 %s994_s2, 4  ;;  %s840_s3 = smov [#allocation3]   ;;  %s43_s9 = int_to_ptr.hbm [resolvable:$true] %s42_s9 }
   0xa   :  { %s21_s10 = sshll.u32 %s840_s3, 4  ;;  %s841_s11 = smov [#allocation8]   ;;  %s22_s10 = int_to_ptr.vmem [resolvable:$true] %s21_s10 }
   0xb   :  { %24 = dma.hbm_to_vmem [thread:$0]  %s20_s1, 128, %s22_s10, [#allocation4]  }
   0xc   :  { %s44_s12 = sshll.u32 %s841_s11, 4  ;;  %s68_s15 = sshll.u32 %s996_s4, 4  ;;  %s45_s12 = int_to_ptr.vmem [resolvable:$true] %s44_s12  ;;  %s69_s15 = int_to_ptr.hbm [resolvable:$true] %s68_s15 }
   0xd   :  { %50 = dma.hbm_to_vmem [thread:$0]  %s43_s9, 512, %s45_s12, [#allocation7], %s837_s26, %s837_s26, %s838_s27  }
   0xe   :  { %s842_s0 = smov [#allocation11]  }
   0xf   :  { %s70_s16 = sshll.u32 %s842_s0, 4  ;;  %s71_s16 = int_to_ptr.vmem [resolvable:$true] %s70_s16 }
  0x10   :  { %76 = dma.hbm_to_vmem [thread:$0]  %s69_s15, 512, %s71_s16, [#allocation10], %s837_s26, %s837_s26, %s838_s27  }
  0x11   :  { %828 = dma.done.wait [#allocation4], 128  }
  0x12   :  { %829 = vsyncadd [#allocation4], 4294967168 }
  0x13   :  { %830 = dma.done.wait [#allocation7], 1024  }
  0x14   :  { %831 = vsyncadd [#allocation7], 4294966272 }
  0x15   :  { %832 = dma.done.wait [#allocation10], 1024  }
  0x16   :  { %833 = vsyncadd [#allocation10], 4294966272  ;;  %vm110_vm0 = vcmask 261120   ;;  %v105_v0 = vld [vmem:[#allocation8 + $0x18] sm:$0xff]  ;;  %v104_v2 = vld [vmem:[#allocation8 + $0x10] sm:$0xff]  ;;  %vm220_vm1 = vcmask 64512  }
  0x17   :  { %v101_v1 = vld [vmem:[#allocation6 + $0x18] sm:$0xff]  ;;  %624 = vmatpush.xpose.msk.msra.mxu1 %vm110_vm0, %v105_v0  ;;  %v100_v3 = vld [vmem:[#allocation6 + $0x10] sm:$0xff]  ;;  %v103_v5 = vld [vmem:[#allocation8 + $0x8] sm:$0xff]  ;;  %s843_s2 = smov 120   ;;  %s844_s4 = smov 112   ;;  %vm284_vm2 = vcmask 57344  }
  0x18   :  { %619 = vmatpush.xpose.msk.msra.mxu0 %vm110_vm0, %v101_v1  ;;  %v97_v4 = vld [vmem:[#allocation3] sm:$0xff]  ;;  %v99_v6 = vld [vmem:[#allocation6 + $0x8] sm:$0xff]  ;;  %v102_v7 = vld [vmem:[#allocation8] sm:$0xff]  ;;  %s845_s17 = smov 104   ;;  %vm302_vm3 = vcmask 61444   ;;  %s846_s18 = smov 16  }
  0x19   :  { %629 = vmatpush.xpose.msk.msra.mxu2 %vm110_vm0, %v97_v4  ;;  %v98_v8 = vld [vmem:[#allocation6] sm:$0xff]  ;;  %v107_v33 = vld [vmem:[#allocation9 + $0x8] sm:$0xff]  ;;  %v108_v45 = vld [vmem:[#allocation9 + $0x10] sm:$0xff]  ;;  %s847_s19 = smov 24   ;;  %vm290_vm4 = vcmask 123969   ;;  %vm304_vm5 = vcmask 128069  }
  0x1a   :  { %v106_v14 = vld [vmem:[#allocation9] sm:$0xff]  ;;  %v109_v59 = vld [vmem:[#allocation9 + $0x18] sm:$0xff]  ;;  %vm295_vm6 = vcmask 190594   ;;  %vm306_vm7 = vcmask 194694   ;;  %vm300_vm8 = vcmask 257219   ;;  %vm308_vm9 = vcmask 261319  }
  0x1b   :  { %625 = vmatpush.xpose.msk.msra.mxu1 %vm110_vm0, %v104_v2  ;;  %s848_s20 = smov [#allocation12]   ;;  %s607_s24 = sshll.u32 %s997_s5, 4  ;;  %s608_s24 = int_to_ptr.hbm [resolvable:$true] %s607_s24 }
  0x1c   :  { %620 = vmatpush.xpose.msk.msra.mxu0 %vm110_vm0, %v100_v3  ;;  %630 = vmatmul.msk.f32.vlgmr.msra.gmra.mxu2 %vm110_vm0, %v106_v14  ;;  %v563_v14 = vld [vmem:[#allocation11 + $0x18] sm:$0xff]  ;;  %s605_s21 = sshll.u32 %s848_s20, 4  ;;  %s606_s21 = int_to_ptr.vmem [resolvable:$true] %s605_s21 }
  0x1d   :  { %650 = vmatpush.xpose.msk.msrb.mxu2 %vm110_vm0, %v563_v14 }
  0x1f   :  { %626 = vmatpush.xpose.msk.msra.mxu1 %vm110_vm0, %v103_v5 }
  0x20   :  { %621 = vmatpush.xpose.msk.msra.mxu0 %vm110_vm0, %v99_v6 }
  0x23   :  { %627 = vmatpush.xpose.msk.msra.mxu1 %vm110_vm0, %v102_v7 }
  0x24   :  { %622 = vmatpush.xpose.msk.msra.mxu0 %vm110_vm0, %v98_v8  ;;  %631 = vmatmul.msk.f32.gmra.mxu2 %vm110_vm0, %v107_v33 }
  0x26   :  { %628 = vmatmul.msk.f32.vlgmr.msra.gmra.mxu1 %vm110_vm0, %v97_v4 }
  0x27   :  { %623 = vmatmul.msk.f32.vlgmr.msra.gmra.mxu0 %vm110_vm0, %v97_v4 }
  0x2c   :  { %632 = vmatmul.msk.f32.gmra.mxu2 %vm110_vm0, %v108_v45 }
  0x34   :  { %633 = vmatmul.msk.f32.gmra.mxu2 %vm110_vm0, %v109_v59 }
  0x9f   :  { %v208_v24 = vpop.f32.mrf.mxu2 }
  0xa3   :  { %v176_v9 = vpop.f32.mrf.mxu1 }
  0xa4   :  { %v143_v10 = vpop.f32.mrf.mxu0  ;;  %312 = vrot.lane.b32.xlu1 %v176_v9, %s843_s2  ;;  %634 = vmatpush.xpose.msk.msra.mxu3 %vm220_vm1, %v176_v9 }
  0xa5   :  { %v146_v11 = vmul.f32 0.35355338, %v143_v10 }
  0xa7   :  { %635 = vmatmul.msk.f32.vlgmr.msra.gmra.mxu3 %vm220_vm1, %v146_v11  ;;  %v211_v50 = vpop.f32.mrf.mxu2 }
  0xac   :  { %310 = vrot.lane.b32.xlu1 %v146_v11, %s843_s2 }
  0xaf   :  { %v214_v54 = vpop.f32.mrf.mxu2 }
  0xb4   :  { %393 = vrot.lane.b32.xlu1 %v146_v11, %s844_s4 }
  0xbc   :  { %476 = vrot.lane.b32.xlu1 %v146_v11, %s845_s17 }
 0x116   :  { %v313_v21 = vpop.permute.xlu1 %312 }
 0x11e   :  { %v311_v25 = vpop.permute.xlu1 %310 }
 0x126   :  { %v394_v27 = vpop.permute.xlu1 %393 }
 0x12a   :  { %v244_v12 = vpop.f32.mrf.mxu3 }
 0x12b   :  { %v247_v13 = vsel %vm220_vm1, %v244_v12, -inf }
 0x12c   :  { %248 = vmax.xlane.f32.xlu0 %v247_v13 }
 0x12e   :  { %v477_v39 = vpop.permute.xlu1 %476 }
 0x19f   :  { %v249_v15 = vpop.xlane.xlu0 %248 }
 0x1a0   :  { %v250_v16 = vsub.f32 %v244_v12, %v249_v15  ;;  %v562_v15 = vld [vmem:[#allocation11 + $0x10] sm:$0xff] }
 0x1a1   :  { %651 = vmatpush.xpose.msk.msrb.mxu2 %vm110_vm0, %v562_v15 }
 0x1a2   :  { %v251_v17 = vmul.f32 1.442695, %v250_v16  ;;  %v561_v16 = vld [vmem:[#allocation11 + $0x8] sm:$0xff] }
 0x1a4   :  { %668 = vpow2.f32 %v251_v17 }
 0x1a5   :  { %652 = vmatpush.xpose.msk.msrb.mxu2 %vm110_vm0, %v561_v16 }
 0x1aa   :  { %v669_v18 = vpop.eup %668 }
 0x1ab   :  { %v253_v19 = vsel %vm220_vm1, %v669_v18, 0.0 }
 0x1ac   :  { %254 = vadd.xlane.f32.xlu0 %v253_v19 }
 0x1c0   :  { %395 = vrot.lane.b32.xlu0 %v176_v9, %s844_s4 }
 0x21f   :  { %v255_v20 = vpop.xlane.xlu0 %254 }
 0x220   :  { %670 = vrcp.f32 %v255_v20 }
 0x226   :  { %v671_v22 = vpop.eup %670 }
 0x227   :  { %v257_v23 = vmul.f32 %v671_v22, %v669_v18  ;;  %v560_v18 = vld [vmem:[#allocation11] sm:$0xff] }
 0x228   :  { %653 = vmatpush.xpose.msk.msrb.mxu2 %vm110_vm0, %v560_v18 }
 0x229   :  { %636 = vmatpush.xpose.msk.msrb.mxu3 %vm220_vm1, %v257_v23 }
 0x22c   :  { %637 = vmatmul.msk.f32.vlgmr.msrb.gmra.mxu3 %vm220_vm1, %v208_v24 }
 0x22d   :  { %638 = vmatpush.xpose.msk.msra.mxu3 %vm220_vm1, %v313_v21 }
 0x232   :  { %v396_v26 = vpop.permute.xlu0 %395 }
 0x233   :  { %642 = vmatpush.xpose.msk.msrb.mxu1 %vm220_vm1, %v396_v26 }
 0x234   :  { %639 = vmatmul.msk.f32.vlgmr.msra.gmra.mxu3 %vm220_vm1, %v311_v25 }
 0x236   :  { %643 = vmatmul.msk.f32.vlgmr.msrb.gmra.mxu1 %vm220_vm1, %v394_v27 }
 0x2af   :  { %v281_v28 = vpop.f32.mrf.mxu3 }
 0x2b0   :  { %285 = vst.msk [vmem:[#allocation2] sm:$0x1] %vm284_vm2, %v281_v28 }
 0x2b1   :  { %303 = vst.msk [vmem:[#allocation2 - $0x3] sm:$0x10] %vm302_vm3, %v281_v28 }
 0x2b3   :  { %v418_v29 = vpop.f32.mrf.mxu1 }
 0x2b4   :  { %v421_v30 = vsel %vm220_vm1, %v418_v29, -inf }
 0x2b5   :  { %422 = vmax.xlane.f32.xlu1 %v421_v30 }
 0x2b7   :  { %v335_v31 = vpop.f32.mrf.mxu3 }
 0x2b8   :  { %v338_v32 = vsel %vm220_vm1, %v335_v31, -inf }
 0x2b9   :  { %339 = vmax.xlane.f32.xlu2 %v338_v32 }
 0x328   :  { %v423_v40 = vpop.xlane.xlu1 %422 }
 0x329   :  { %v424_v41 = vsub.f32 %v418_v29, %v423_v40 }
 0x32b   :  { %v425_v42 = vmul.f32 1.442695, %v424_v41 }
 0x32c   :  { %v340_v34 = vpop.xlane.xlu2 %339 }
 0x32d   :  { %v341_v35 = vsub.f32 %v335_v31, %v340_v34 }
 0x32f   :  { %v342_v36 = vmul.f32 1.442695, %v341_v35 }
 0x331   :  { %672 = vpow2.f32 %v342_v36 }
 0x332   :  { %674 = vpow2.f32 %v425_v42 }
 0x337   :  { %v673_v37 = vpop.eup %672 }
 0x338   :  { %v344_v38 = vsel %vm220_vm1, %v673_v37, 0.0  ;;  %v675_v43 = vpop.eup %674 }
 0x339   :  { %345 = vadd.xlane.f32.xlu2 %v344_v38  ;;  %v427_v44 = vsel %vm220_vm1, %v675_v43, 0.0 }
 0x351   :  { %478 = vrot.lane.b32.xlu2 %v176_v9, %s845_s17  ;;  %v217_v9 = vpop.f32.mrf.mxu2 }
 0x37a   :  { %428 = vadd.xlane.f32.xlu2 %v427_v44 }
 0x3ac   :  { %v346_v46 = vpop.xlane.xlu2 %345 }
 0x3ad   :  { %676 = vrcp.f32 %v346_v46 }
 0x3b3   :  { %v677_v47 = vpop.eup %676 }
 0x3b4   :  { %v348_v48 = vmul.f32 %v677_v47, %v673_v37  ;;  %v479_v49 = vpop.permute.xlu2 %478 }
 0x3b6   :  { %640 = vmatpush.xpose.msk.msrb.mxu0 %vm220_vm1, %v348_v48 }
 0x3b9   :  { %641 = vmatmul.msk.f32.vlgmr.msrb.gmra.mxu0 %vm220_vm1, %v211_v50 }
 0x3ba   :  { %646 = vmatpush.xpose.msk.msra.mxu0 %vm220_vm1, %v479_v49 }
 0x3c1   :  { %647 = vmatmul.msk.f32.vlgmr.msra.gmra.mxu0 %vm220_vm1, %v477_v39 }
 0x3ed   :  { %v429_v51 = vpop.xlane.xlu2 %428 }
 0x3ee   :  { %678 = vrcp.f32 %v429_v51 }
 0x3f4   :  { %v679_v52 = vpop.eup %678 }
 0x3f5   :  { %v431_v53 = vmul.f32 %v679_v52, %v675_v43 }
 0x3f7   :  { %644 = vmatpush.xpose.msk.msrb.mxu3 %vm220_vm1, %v431_v53 }
 0x3fa   :  { %645 = vmatmul.msk.f32.vlgmr.msrb.gmra.mxu3 %vm220_vm1, %v214_v54 }
 0x436   :  { %v372_v55 = vpop.f32.mrf.mxu0 }
 0x437   :  { %377 = vrot.lane.b32.xlu2 %v372_v55, %s838_s27  ;;  %375 = vst.msk [vmem:[#allocation2 + $0x2] sm:$0x1] %vm284_vm2, %v372_v55 }
 0x438   :  { %389 = vst.msk [vmem:[#allocation2 - $0x1] sm:$0x10] %vm302_vm3, %v372_v55 }
 0x43e   :  { %v501_v56 = vpop.f32.mrf.mxu0 }
 0x43f   :  { %292 = vrot.lane.b32.xlu2 %v281_v28, %s846_s18  ;;  %v504_v57 = vsel %vm220_vm1, %v501_v56, -inf }
 0x440   :  { %505 = vmax.xlane.f32.xlu0 %v504_v57 }
 0x454   :  { %287 = vrot.lane.b32.xlu0 %v281_v28, %s838_s27 }
 0x45c   :  { %381 = vrot.lane.b32.xlu0 %v372_v55, %s846_s18 }
 0x464   :  { %297 = vrot.lane.b32.xlu0 %v281_v28, %s847_s19 }
 0x47d   :  { %v455_v63 = vpop.f32.mrf.mxu3 }
 0x47e   :  { %458 = vst.msk [vmem:[#allocation2 + $0x4] sm:$0x1] %vm284_vm2, %v455_v63 }
 0x47f   :  { %472 = vst.msk [vmem:[#allocation2 + $0x1] sm:$0x10] %vm302_vm3, %v455_v63 }
 0x491   :  { %v378_v58 = vpop.permute.xlu2 %377 }
 0x492   :  { %380 = vst.msk [vmem:[#allocation2 + $0x1] sm:$0x2] %vm290_vm4, %v378_v58 }
 0x493   :  { %390 = vst.msk [vmem:[#allocation2 - $0x2] sm:$0x20] %vm304_vm5, %v378_v58 }
 0x499   :  { %v293_v3 = vpop.permute.xlu2 %292 }
 0x4b3   :  { %v506_v60 = vpop.xlane.xlu0 %505 }
 0x4b4   :  { %v507_v61 = vsub.f32 %v501_v56, %v506_v60 }
 0x4b6   :  { %v508_v62 = vmul.f32 1.442695, %v507_v61 }
 0x4b8   :  { %680 = vpow2.f32 %v508_v62 }
 0x4be   :  { %v681_v0 = vpop.eup %680 }
 0x4bf   :  { %v510_v1 = vsel %vm220_vm1, %v681_v0, 0.0 }
 0x4c0   :  { %511 = vadd.xlane.f32.xlu1 %v510_v1 }
 0x4c6   :  { %v288_v2 = vpop.permute.xlu0 %287 }
 0x4c7   :  { %291 = vst.msk [vmem:[#allocation2 - $0x1] sm:$0x2] %vm290_vm4, %v288_v2 }
 0x4c8   :  { %305 = vst.msk [vmem:[#allocation2 - $0x4] sm:$0x20] %vm304_vm5, %v288_v2 }
 0x4c9   :  { %296 = vst.msk [vmem:[#allocation2 - $0x2] sm:$0x4] %vm295_vm6, %v293_v3 }
 0x4ca   :  { %307 = vst.msk [vmem:[#allocation2 - $0x5] sm:$0x40] %vm306_vm7, %v293_v3 }
 0x4ce   :  { %v382_v4 = vpop.permute.xlu0 %381 }
 0x4cf   :  { %384 = vst.msk [vmem:[#allocation2] sm:$0x4] %vm295_vm6, %v382_v4 }
 0x4d0   :  { %391 = vst.msk [vmem:[#allocation2 - $0x3] sm:$0x40] %vm306_vm7, %v382_v4 }
 0x4d6   :  { %v298_v5 = vpop.permute.xlu0 %297 }
 0x4d7   :  { %301 = vst.msk [vmem:[#allocation2 - $0x3] sm:$0x8] %vm300_vm8, %v298_v5 }
 0x4d8   :  { %309 = vst.msk [vmem:[#allocation2 - $0x6] sm:$0x80] %vm308_vm9, %v298_v5 }
 0x4d9   :  { %460 = vrot.lane.b32.xlu1 %v455_v63, %s838_s27 }
 0x4e1   :  { %464 = vrot.lane.b32.xlu1 %v455_v63, %s846_s18 }
 0x4e9   :  { %385 = vrot.lane.b32.xlu1 %v372_v55, %s847_s19 }
 0x533   :  { %v512_v6 = vpop.xlane.xlu1 %511 }
 0x534   :  { %682 = vrcp.f32 %v512_v6 }
 0x53a   :  { %v683_v7 = vpop.eup %682 }
 0x53b   :  { %v514_v8 = vmul.f32 %v683_v7, %v681_v0 }
 0x53d   :  { %648 = vmatpush.xpose.msk.msra.mxu1 %vm220_vm1, %v514_v8 }
 0x540   :  { %649 = vmatmul.msk.f32.vlgmr.msra.gmra.mxu1 %vm220_vm1, %v217_v9 }
 0x54b   :  { %v461_v10 = vpop.permute.xlu1 %460 }
 0x54c   :  { %463 = vst.msk [vmem:[#allocation2 + $0x3] sm:$0x2] %vm290_vm4, %v461_v10 }
 0x54d   :  { %473 = vst.msk [vmem:[#allocation2] sm:$0x20] %vm304_vm5, %v461_v10 }
 0x553   :  { %v465_v11 = vpop.permute.xlu1 %464 }
 0x554   :  { %467 = vst.msk [vmem:[#allocation2 + $0x2] sm:$0x4] %vm295_vm6, %v465_v11 }
 0x555   :  { %474 = vst.msk [vmem:[#allocation2 - $0x1] sm:$0x40] %vm306_vm7, %v465_v11 }
 0x55b   :  { %v386_v12 = vpop.permute.xlu1 %385 }
 0x55c   :  { %388 = vst.msk [vmem:[#allocation2 - $0x1] sm:$0x8] %vm300_vm8, %v386_v12 }
 0x55d   :  { %392 = vst.msk [vmem:[#allocation2 - $0x4] sm:$0x80] %vm308_vm9, %v386_v12 }
 0x5bd   :  { %v538_v13 = vpop.f32.mrf.mxu1 }
 0x5be   :  { %541 = vst.msk [vmem:[#allocation2 + $0x6] sm:$0x1] %vm284_vm2, %v538_v13  ;;  %547 = vrot.lane.b32.xlu2 %v538_v13, %s846_s18  ;;  %543 = vrot.lane.b32.xlu0 %v538_v13, %s838_s27 }
 0x5bf   :  { %555 = vst.msk [vmem:[#allocation2 + $0x3] sm:$0x10] %vm302_vm3, %v538_v13 }
 0x5c6   :  { %468 = vrot.lane.b32.xlu2 %v455_v63, %s847_s19  ;;  %551 = vrot.lane.b32.xlu0 %v538_v13, %s847_s19 }
 0x618   :  { %v548_v17 = vpop.permute.xlu2 %547 }
 0x620   :  { %v469_v19 = vpop.permute.xlu2 %468 }
 0x621   :  { %471 = vst.msk [vmem:[#allocation2 + $0x1] sm:$0x8] %vm300_vm8, %v469_v19 }
 0x622   :  { %475 = vst.msk [vmem:[#allocation2 - $0x2] sm:$0x80] %vm308_vm9, %v469_v19 }
 0x630   :  { %v544_v20 = vpop.permute.xlu0 %543 }
 0x631   :  { %546 = vst.msk [vmem:[#allocation2 + $0x5] sm:$0x2] %vm290_vm4, %v544_v20 }
 0x632   :  { %556 = vst.msk [vmem:[#allocation2 + $0x2] sm:$0x20] %vm304_vm5, %v544_v20 }
 0x633   :  { %550 = vst.msk [vmem:[#allocation2 + $0x4] sm:$0x4] %vm295_vm6, %v548_v17 }
 0x634   :  { %557 = vst.msk [vmem:[#allocation2 + $0x1] sm:$0x40] %vm306_vm7, %v548_v17 }
 0x638   :  { %v552_v21 = vpop.permute.xlu0 %551 }
 0x639   :  { %554 = vst.msk [vmem:[#allocation2 + $0x3] sm:$0x8] %vm300_vm8, %v552_v21 }
 0x63a   :  { %558 = vst.msk [vmem:[#allocation2] sm:$0x80] %vm308_vm9, %v552_v21 }
 0x641   :  { %v559_v22 = vld [vmem:[#allocation2] sm:$0xff] }
 0x642   :  { %654 = vmatmul.msk.f32.vlgmr.msrb.gmra.mxu2 %vm110_vm0, %v559_v22 }
 0x6c5   :  { %v596_v23 = vpop.f32.mrf.mxu2 }
 0x6c6   :  { %599 = vst.msk [vmem:[#allocation12] sm:$0xff] %vm110_vm0, %v596_v23 }
 0x6c7   :  { %610 = dma.vmem_to_hbm [thread:$0]  %s606_s21, 128, %s608_s24, [#allocation5]  }
 0x6c8   :  { %834 = dma.done.wait [#allocation5], 128  }
 0x6c9   :  { %835 = vsyncadd [#allocation5], 4294967168 }
 0x6ca   :  { %615 = vsyncpa [#allocation4], 1 }
 0x6cb   :  { %616 = vsyncpa [#allocation7], 1 }
 0x6cc   :  { %617 = vsyncpa [#allocation10], 1 }
 0x6cd   :  { %618 = vsyncpa [#allocation5], 1 }

</bundles_post_ra>
